<compile_context>
chip_gen: v7x
topology: tpu7x:2x2x1
jax: 0.10.0
libtpu: 0.0.40
codegen_flags: <defaults>
</compile_context>

<pallas_src>
import math

import jax
import jax.numpy as jnp
from jax.experimental import pallas as pl
from jax.experimental.pallas import tpu as pltpu


def _build_pe(d_model: int, max_len: int = 20) -> jnp.ndarray:
    """Positional-encoding buffer matching the PyTorch __init__ of the spec exactly."""
    position = jnp.arange(0, max_len, dtype=jnp.float32)[:, None]            # (max_len, 1)
    div_term = jnp.exp(
        jnp.arange(0, d_model, 2, dtype=jnp.float32)
        * (-math.log(10000.0) * 2.0 / d_model)                               # spec uses *2/d
    )                                                                        # (ceil(d/2),)
    angles = position * div_term                                             # (max_len, ceil(d/2))
    pe = jnp.zeros((max_len, d_model), dtype=jnp.float32)
    pe = pe.at[:, 0::2].set(jnp.sin(angles))
    # Guard odd d_model: the 1::2 slice has floor(d/2) columns.
    pe = pe.at[:, 1::2].set(jnp.cos(angles)[:, : d_model // 2])
    return pe


def _add_pe_kernel(x_ref, pe_ref, o_ref):
    # x_ref: (BB, BR, L) block; pe_ref: (BR, L) block shared across batch.
    # Pure VPU broadcast add; explicit cast keeps the store dtype-exact.
    o_ref[...] = (x_ref[...] + pe_ref[...]).astype(o_ref.dtype)


# ~4 MiB per x/out block. Double-buffered live set: 2*x + 2*out + 2*pe blocks
# ~24 MiB worst case -> explicit vmem_limit_bytes below covers it on every gen.
_BLOCK_BYTES_CAP = 4 * 1024 * 1024
# Below this total size, do everything in one grid step (no per-step overhead).
_SMALL_TOTAL_BYTES = 1 * 1024 * 1024
# Ceiling for the scoped-VMEM request: well under v7x's 64 MiB physical VMEM.
_VMEM_LIMIT_CEIL = 48 * 1024 * 1024
_VMEM_LIMIT_FLOOR = 16 * 1024 * 1024


def positional_encoding_forward(x: jnp.ndarray, pe: jnp.ndarray) -> jnp.ndarray:
    """out[b, s, d] = x[b, s, d] + pe[s, d]  (pe sliced to seq length)."""
    b, s, d = x.shape
    max_len = pe.shape[0]
    if s > max_len:
        raise ValueError(
            f"sequence length {s} exceeds positional-encoding max_len {max_len}"
        )
    if pe.dtype != x.dtype:
        # Hot path should pre-cast via make_positional_encoding(); this is a fallback.
        pe = pe.astype(x.dtype)

    pe_slice = pe[:s, :]                       # cheap leading-row slice, no cast
    dt_bytes = jnp.dtype(x.dtype).itemsize
    flat = s * d
    needs_d_slice = False

    if flat % 128 == 0:
        # Lane-dense view: last dim is exactly 128 lanes -> unmasked full-lane stores.
        rows, lane = flat // 128, 128
        x_view = x.reshape(b, rows, lane)
        pe_view = pe_slice.reshape(rows, lane)
    elif d < 128:
        # Narrow d: pad to a full 128-lane row (unmasked vst) and slice output back.
        pad = 128 - d
        rows, lane = s, 128
        x_view = jnp.pad(x, ((0, 0), (0, 0), (0, pad)))
        pe_view = jnp.pad(pe_slice, ((0, 0), (0, pad)))
        needs_d_slice = True
    else:
        # TODO(synk): d >= 128 but not lane-aligned still emits masked edge stores.
        rows, lane = s, d
        x_view = x
        pe_view = pe_slice

    row_bytes = lane * dt_bytes
    total_bytes = b * rows * row_bytes
    # Sublane-packing multiple per dtype: 8 (f32), 16 (bf16/f16), 32 (int8/fp8).
    sublane_mult = max(8, (8 * 4) // dt_bytes)

    if total_bytes <= _SMALL_TOTAL_BYTES:
        # Tiny input: one block covers everything -> single grid step.
        bb, br = b, rows
    else:
        bb = 1
        cap_rows = max(1, _BLOCK_BYTES_CAP // row_bytes)
        if cap_rows >= rows:
            br = rows                                        # full extent (valid block)
        else:
            br = max(sublane_mult, (cap_rows // sublane_mult) * sublane_mult)

    # Row tiles OUTER, batch INNER: the pe block index (t, 0) repeats across the
    # inner batch loop, so Pallas DMAs each pe row-tile exactly once -> total pe
    # read traffic is s*d instead of b*s*d.
    grid = (pl.cdiv(rows, br), pl.cdiv(b, bb))

    x_block_bytes = bb * br * row_bytes
    pe_block_bytes = br * row_bytes
    vmem_needed = 2 * (2 * x_block_bytes) + 2 * pe_block_bytes   # x, out, pe double-buffered
    vmem_limit = min(
        max(int(vmem_needed * 1.25) + (1 << 20), _VMEM_LIMIT_FLOOR),
        _VMEM_LIMIT_CEIL,
    )

    cost = pl.CostEstimate(
        flops=b * s * d,
        transcendentals=0,
        bytes_accessed=(2 * b * s * d + s * d) * dt_bytes,   # x read + out write + pe once
    )

    out_view = pl.pallas_call(
        _add_pe_kernel,
        out_shape=jax.ShapeDtypeStruct(x_view.shape, x.dtype),
        grid_spec=pltpu.PrefetchScalarGridSpec(
            num_scalar_prefetch=0,
            grid=grid,
            in_specs=[
                # x: one (bb, br, lane) tile per (row-tile, batch-block) grid point.
                pl.BlockSpec((bb, br, lane), lambda t, i: (i, t, 0)),
                # pe: shared across batch; block index constant over the inner axis.
                pl.BlockSpec((br, lane), lambda t, i: (t, 0)),
            ],
            out_specs=pl.BlockSpec((bb, br, lane), lambda t, i: (i, t, 0)),
        ),
        compiler_params=pltpu.CompilerParams(
            # Split row tiles across v7x's two TensorCores (keeps per-TC pe reuse);
            # batch stays sequential so pe is never re-fetched per core along batch.
            dimension_semantics=("parallel", "arbitrary"),
            vmem_limit_bytes=vmem_limit,
        ),
        cost_estimate=cost,
    )(x_view, pe_view)

    out = out_view[:, :, :d] if needs_d_slice else out_view
    return out.reshape(b, s, d)


def make_positional_encoding(d_model: int, max_len: int = 20, dtype=jnp.float32):
    """Module-init-time setup: builds pe once, dtype-matched (cast hoisted off hot path)."""
    pe = _build_pe(d_model, max_len).astype(dtype)

    def forward(x: jnp.ndarray) -> jnp.ndarray:
        return positional_encoding_forward(x, pe)

    return forward


if __name__ == "__main__":
    d_model = 32
    max_len = 20
    batch, seq = 2, 8

    key = jax.random.PRNGKey(0)
    x = jax.random.normal(key, (batch, seq, d_model), dtype=jnp.float32)

    forward = make_positional_encoding(d_model, max_len, dtype=jnp.float32)
    out = jax.block_until_ready(forward(x))

    # Sanity check against the plain-JAX reference of the module's forward.
    pe = _build_pe(d_model, max_len)
    ref = x + pe[:seq, :]
    assert out.shape == (batch, seq, d_model)
    assert jnp.allclose(out, ref, atol=1e-6), "mismatch vs reference"

    print("KERNEL_OK")
</pallas_src>

<mosaic_0001>
module attributes {stable_mosaic.version = 11 : i64} {
  func.func @_add_pe_kernel(%arg0: i32, %arg1: i32, %arg2: memref<2x2x128xf32, #tpu.memory_space<vmem>>, %arg3: memref<2x128xf32, #tpu.memory_space<vmem>>, %arg4: memref<2x2x128xf32, #tpu.memory_space<vmem>>) attributes {dimension_semantics = [#tpu.dimension_semantics<parallel>, #tpu.dimension_semantics<arbitrary>], iteration_bounds = array<i64: 1, 1>, scalar_prefetch = 0 : i64, scratch_operands = 0 : i64, tpu.core_type = #tpu.core_type<tc>, window_params = [{transform_indices = @transform_0, window_bounds = array<i64: 2, 2, 128>}, {transform_indices = @transform_1, window_bounds = array<i64: 2, 128>}, {transform_indices = @transform_2, window_bounds = array<i64: 2, 2, 128>}]} {
    %c0 = arith.constant 0 : index
    %c0_0 = arith.constant 0 : index
    %c0_1 = arith.constant 0 : index
    %0 = vector.load %arg2[%c0, %c0_0, %c0_1] : memref<2x2x128xf32, #tpu.memory_space<vmem>>, vector<2x2x128xf32>
    %c0_2 = arith.constant 0 : index
    %c0_3 = arith.constant 0 : index
    %1 = vector.load %arg3[%c0_2, %c0_3] : memref<2x128xf32, #tpu.memory_space<vmem>>, vector<2x128xf32>
    %2 = vector.shape_cast %1 : vector<2x128xf32> to vector<1x2x128xf32>
    %3 = vector.broadcast %2 : vector<1x2x128xf32> to vector<2x2x128xf32>
    %4 = arith.addf %0, %3 : vector<2x2x128xf32>
    %c0_4 = arith.constant 0 : index
    %c0_5 = arith.constant 0 : index
    %c0_6 = arith.constant 0 : index
    %5 = vector.load %arg4[%c0_4, %c0_5, %c0_6] : memref<2x2x128xf32, #tpu.memory_space<vmem>>, vector<2x2x128xf32>
    tpu.vector_store %arg4[%c0_4, %c0_5, %c0_6], %4 {strides = array<i32>} : memref<2x2x128xf32, #tpu.memory_space<vmem>>, vector<2x2x128xf32>,
    return
  }
  func.func @transform_0(%arg0: i32, %arg1: i32) -> (i32, i32, i32) {
    %c0_i32 = arith.constant 0 : i32
    %c0_i32_0 = arith.constant 0 : i32
    return %arg1, %arg0, %c0_i32 : i32, i32, i32
  }
  func.func @transform_1(%arg0: i32, %arg1: i32) -> (i32, i32) {
    %c0_i32 = arith.constant 0 : i32
    %c0_i32_0 = arith.constant 0 : i32
    return %arg0, %c0_i32 : i32, i32
  }
  func.func @transform_2(%arg0: i32, %arg1: i32) -> (i32, i32, i32) {
    %c0_i32 = arith.constant 0 : i32
    %c0_i32_0 = arith.constant 0 : i32
    return %arg1, %arg0, %c0_i32 : i32, i32, i32
  }
}

</mosaic_0001>

<bundles_post_ra>
// kernel: tpu_custom_call.1
= control target key start
LH: loop header
LB: loop body
LE: loop exit
PB: predicated region body
PF: predicated region fallthrough
CT: control target
= control target key end

     0   :  { %7 = vsyncpa [#allocation3], 0  ;;  %s154_s0 = inlined_call_operand.hbm [shape: f32[2,2,128], index: 0, kind: input, shape index: {}]   ;;  %s155_s1 = inlined_call_operand.vmem [shape: f32[2,128], index: 1, kind: input, shape index: {}]   ;;  %s156_s2 = inlined_call_operand.hbm [shape: f32[2,2,128], index: 2, kind: output, shape index: {}]  }
   0x1   :  { %8 = vsyncpa [#allocation4], 0  ;;  %s102_s9 = smov [#allocation2]   ;;  %s54_s13 = scalar_lea.hbm %s154_s0, 64 }
   0x2   :  { %s14_s10 = sshll.u32 %s102_s9, 4  ;;  %p55_p0 = scmp.ne.s32.totalorder %s154_s0, %s54_s13  ;;  %s15_s10 = int_to_ptr.vmem [resolvable:$true] %s14_s10 }
   0x3   :  { %p58_p1 = scmp.lt.u32.totalorder %s54_s13, %s154_s0 }
   0x5   :  { %p60_p2 = pnand %p58_p1, %p55_p0 }
   0x7   :  { %63 = shalt.err (!%p60_p2)
}
   0x8   :  { %s64_s18 = scalar_lea.vmem %s15_s10, 64  ;;  %p69_p4 = scmp.lt.s32.totalorder %s15_s10, %s15_s10 }
   0x9   :  { %p65_p3 = scmp.ne.s32.totalorder %s15_s10, %s64_s18  ;;  %p70_p5 = scmp.lt.s32.totalorder %s64_s18, %s64_s18 }
   0xb   :  { %p71_p6 = por %p70_p5, %p69_p4 }
   0xd   :  { %p72_p7 = pnand %p71_p6, %p65_p3 }
   0xf   :  { %75 = shalt.err (!%p72_p7)
}
  0x10   :  { %s103_s19 = smov 32   ;;  %s104_s20 = smov 2  }
  0x11   :  { %20 = dma.hbm_to_vmem [thread:$0]  %s154_s0, 64, %s15_s10, [#allocation3], %s103_s19, %s103_s19, %s104_s20  }
  0x12   :  { %98 = dma.done.wait [#allocation3], 64  }
  0x13   :  { %99 = vsyncadd [#allocation3], 4294967232  ;;  %s105_s23 = smov [#allocation5]   ;;  %v26_v0 = vld [vmem:[#allocation2] sm:$0x3] }
  0x14   :  { %s38_s24 = sshll.u32 %s105_s23, 4  ;;  %v28_v1 = vld [vmem:[%s155_s1] sm:$0x3]  ;;  %v27_v2 = vld [vmem:[#allocation2 + $0x2] sm:$0x3]  ;;  %s39_s24 = int_to_ptr.vmem [resolvable:$true] %s38_s24 }
  0x15   :  { %v29_v3 = vadd.f32 %v28_v1, %v26_v0  ;;  %v30_v4 = vadd.f32 %v28_v1, %v27_v2  ;;  %s76_s27 = scalar_lea.vmem %s39_s24, 64  ;;  %p81_p9 = scmp.lt.s32.totalorder %s39_s24, %s39_s24 }
  0x16   :  { %p77_p8 = scmp.ne.s32.totalorder %s39_s24, %s76_s27  ;;  %p82_p10 = scmp.lt.s32.totalorder %s76_s27, %s76_s27 }
  0x17   :  { %31 = vst [vmem:[#allocation5] sm:$0x3] %v29_v3  ;;  %32 = vst [vmem:[#allocation5 + $0x2] sm:$0x3] %v30_v4 }
  0x18   :  { %p83_p11 = por %p82_p10, %p81_p9 }
  0x1a   :  { %p84_p12 = pnand %p83_p11, %p77_p8 }
  0x1c   :  { %87 = shalt.err (!%p84_p12)
}
  0x1d   :  { %s88_s29 = scalar_lea.hbm %s156_s2, 64 }
  0x1e   :  { %p89_p13 = scmp.ne.s32.totalorder %s156_s2, %s88_s29  ;;  %p92_p0 = scmp.lt.u32.totalorder %s88_s29, %s156_s2 }
  0x20   :  { %p94_p1 = pnand %p92_p0, %p89_p13 }
  0x22   :  { %97 = shalt.err (!%p94_p1)
}
  0x23   :  { %44 = dma.vmem_to_hbm [thread:$0]  %s39_s24, 64, %s156_s2, [#allocation4], %s103_s19, %s103_s19, %s104_s20  }
  0x24   :  { %100 = dma.done.wait [#allocation4], 64  }
  0x25   :  { %101 = vsyncadd [#allocation4], 4294967232 }
  0x26   :  { %48 = vsyncpa [#allocation3], 1 }
  0x27   :  { %49 = vsyncpa [#allocation4], 1 }

</bundles_post_ra>
